<compile_context>
chip_gen: v7x
topology: tpu7x:2x2x1
jax: 0.10.0
libtpu: 0.0.40
codegen_flags: <defaults>
</compile_context>

<pallas_src>
import jax
import jax.numpy as jnp
from jax.experimental import pallas as pl
from jax.experimental.pallas import tpu as pltpu

EPS = 1e-5
LANES = 128          # lane-dense output width (classes padded up to this)
NEG_BIG = -1e30      # padded-class logit -> exp() == 0, softmax unaffected


def fcnn_kernel(x_ref, w1_ref, bn1_ref, w2_ref, bn2_ref, w3_ref, b3_ref, out_ref):
    x = x_ref[...]
    inv_b = 1.0 / x.shape[0]

    def bn_relu(h, bn_ref):
        # One-pass stats: both sublane reductions issue back-to-back on the XLU.
        s1 = jnp.sum(h, axis=0, keepdims=True)
        s2 = jnp.sum(h * h, axis=0, keepdims=True)
        mu = s1 * inv_b
        var = s2 * inv_b - mu * mu                          # biased (training) variance
        scale = bn_ref[0:1, :] * jax.lax.rsqrt(var + EPS)   # gamma folded into scale
        shift = bn_ref[1:2, :] - mu * scale                 # beta folded into shift
        return jnp.maximum(h * scale + shift, 0.0)

    # fc1/fc2 biases omitted: BN subtracts the batch mean, cancelling them exactly.
    h = bn_relu(jnp.dot(x, w1_ref[...], preferred_element_type=jnp.float32), bn1_ref)
    h = bn_relu(jnp.dot(h, w2_ref[...], preferred_element_type=jnp.float32), bn2_ref)

    logits = jnp.dot(h, w3_ref[...], preferred_element_type=jnp.float32) + b3_ref[...]
    m = jnp.max(logits, axis=1, keepdims=True)
    e = jnp.exp(logits - m)
    # approx reciprocal -> EUP slot (otherwise idle); padded classes contribute 0.
    out_ref[...] = (e * pl.reciprocal(jnp.sum(e, axis=1, keepdims=True), approx=True)
                    ).astype(out_ref.dtype)


def fcnn_forward(x, params):
    """x: (B, input_dim) float32 -> (B, num_classes) softmax probabilities."""
    (w1, b1, g1, be1, w2, b2, g2, be2, w3, b3) = params
    del b1, b2  # mathematically cancelled by BatchNorm's batch-mean subtraction
    B = x.shape[0]
    num_classes = w3.shape[1]

    # Pack BN params into one (2, F) array per layer (fewer input DMAs).
    bn1 = jnp.concatenate([g1, be1], axis=0)
    bn2 = jnp.concatenate([g2, be2], axis=0)

    # Pad the class dim to 128 lanes: zero weight columns + NEG_BIG bias, so the
    # padded logits vanish under softmax; slice back to num_classes outside.
    pad = LANES - num_classes
    w3p = jnp.pad(w3, ((0, 0), (0, pad)))
    b3p = jnp.pad(b3, ((0, 0), (0, pad)), constant_values=NEG_BIG)

    # TODO(synk): for large B, add a batch grid (tiles of 512+ rows, weights kept
    # resident) with two-pass BN stats accumulated in VMEM scratch over an
    # "arbitrary" reduction axis, and bf16 matmul operands on v6e/v7x. At B=8 a
    # single resident invocation is fixed-overhead dominated, so no grid here.
    vmem = pl.BlockSpec(memory_space=pltpu.MemorySpace.VMEM)
    out = pl.pallas_call(
        fcnn_kernel,
        out_shape=jax.ShapeDtypeStruct((B, LANES), jnp.float32),
        in_specs=[vmem] * 7,
        out_specs=vmem,
    )(x, w1, bn1, w2, bn2, w3p, b3p)
    return out[:, :num_classes]


def init_params(key, input_dim=20, num_classes=31):
    """Xavier-normal weights (stored as (in, out)), zero fc biases,
    BN gamma=1 / beta=0 -- matching the PyTorch module's initialization."""
    def xavier(key, fan_in, fan_out):
        std = (2.0 / (fan_in + fan_out)) ** 0.5
        return jax.random.normal(key, (fan_in, fan_out), dtype=jnp.float32) * std

    k1, k2, k3 = jax.random.split(key, 3)
    w1 = xavier(k1, input_dim, 128)
    w2 = xavier(k2, 128, 64)
    w3 = xavier(k3, 64, num_classes)
    b1 = jnp.zeros((1, 128), jnp.float32)
    b2 = jnp.zeros((1, 64), jnp.float32)
    b3 = jnp.zeros((1, num_classes), jnp.float32)
    g1 = jnp.ones((1, 128), jnp.float32)
    be1 = jnp.zeros((1, 128), jnp.float32)
    g2 = jnp.ones((1, 64), jnp.float32)
    be2 = jnp.zeros((1, 64), jnp.float32)
    return (w1, b1, g1, be1, w2, b2, g2, be2, w3, b3)


def fcnn_reference(x, params):
    (w1, b1, g1, be1, w2, b2, g2, be2, w3, b3) = params

    def bn(h, g, be):
        mu = jnp.mean(h, axis=0, keepdims=True)
        var = jnp.mean((h - mu) ** 2, axis=0, keepdims=True)
        return (h - mu) / jnp.sqrt(var + EPS) * g + be

    h = jnp.maximum(bn(x @ w1 + b1, g1, be1), 0.0)
    h = jnp.maximum(bn(h @ w2 + b2, g2, be2), 0.0)
    return jax.nn.softmax(h @ w3 + b3, axis=1)


if __name__ == "__main__":
    key = jax.random.PRNGKey(0)
    k_param, k_x = jax.random.split(key)

    B, INPUT_DIM, NUM_CLASSES = 8, 20, 31
    params = init_params(k_param, input_dim=INPUT_DIM, num_classes=NUM_CLASSES)
    x = jax.random.normal(k_x, (B, INPUT_DIM), dtype=jnp.float32)

    out = jax.jit(fcnn_forward)(x, params)
    out = jax.block_until_ready(out)

    ref = fcnn_reference(x, params)
    assert out.shape == (B, NUM_CLASSES)
    # approx=True reciprocal on the EUP is accurate to ~1e-3/1e-4 relative.
    assert jnp.allclose(jnp.sum(out, axis=1), 1.0, atol=3e-3)
    assert jnp.allclose(out, ref, atol=3e-3, rtol=3e-3)

    print("KERNEL_OK")
</pallas_src>

<mosaic_0001>
module attributes {stable_mosaic.version = 11 : i64} {
  func.func @fcnn_kernel(%arg0: memref<8x20xf32, #tpu.memory_space<vmem>>, %arg1: memref<20x128xf32, #tpu.memory_space<vmem>>, %arg2: memref<2x128xf32, #tpu.memory_space<vmem>>, %arg3: memref<128x64xf32, #tpu.memory_space<vmem>>, %arg4: memref<2x64xf32, #tpu.memory_space<vmem>>, %arg5: memref<64x128xf32, #tpu.memory_space<vmem>>, %arg6: memref<1x128xf32, #tpu.memory_space<vmem>>, %arg7: memref<8x128xf32, #tpu.memory_space<vmem>>) attributes {dimension_semantics = [], scalar_prefetch = 0 : i64, scratch_operands = 0 : i64, tpu.core_type = #tpu.core_type<tc>} {
    %c0 = arith.constant 0 : index
    %c0_0 = arith.constant 0 : index
    %0 = vector.load %arg0[%c0, %c0_0] : memref<8x20xf32, #tpu.memory_space<vmem>>, vector<8x20xf32>
    %c0_1 = arith.constant 0 : index
    %c0_2 = arith.constant 0 : index
    %1 = vector.load %arg1[%c0_1, %c0_2] : memref<20x128xf32, #tpu.memory_space<vmem>>, vector<20x128xf32>
    %cst = arith.constant dense<0.000000e+00> : vector<8x128xf32>
    %2 = tpu.matmul %0, %1, %cst {dimension_numbers = #tpu.dot_dimension_numbers<[1], [0], [0], [1], [0, 0, 1, 1], [], []>} : vector<8x20xf32>, vector<20x128xf32>, vector<8x128xf32> -> vector<8x128xf32>
    %cst_3 = arith.constant dense<0.000000e+00> : vector<128xf32>
    %3 = vector.multi_reduction <add>, %2, %cst_3 [0] : vector<8x128xf32> to vector<128xf32>
    %4 = vector.shape_cast %3 : vector<128xf32> to vector<1x128xf32>
    %5 = arith.mulf %2, %2 : vector<8x128xf32>
    %cst_4 = arith.constant dense<0.000000e+00> : vector<128xf32>
    %6 = vector.multi_reduction <add>, %5, %cst_4 [0] : vector<8x128xf32> to vector<128xf32>
    %7 = vector.shape_cast %6 : vector<128xf32> to vector<1x128xf32>
    %cst_5 = arith.constant 1.250000e-01 : f32
    %8 = vector.broadcast %cst_5 : f32 to vector<1x128xf32>
    %9 = arith.mulf %4, %8 : vector<1x128xf32>
    %cst_6 = arith.constant 1.250000e-01 : f32
    %10 = vector.broadcast %cst_6 : f32 to vector<1x128xf32>
    %11 = arith.mulf %7, %10 : vector<1x128xf32>
    %12 = arith.mulf %9, %9 : vector<1x128xf32>
    %13 = arith.subf %11, %12 : vector<1x128xf32>
    %c0_7 = arith.constant 0 : index
    %c0_8 = arith.constant 0 : index
    %14 = vector.load %arg2[%c0_7, %c0_8] : memref<2x128xf32, #tpu.memory_space<vmem>>, vector<1x128xf32>
    %cst_9 = arith.constant 9.99999974E-6 : f32
    %15 = vector.broadcast %cst_9 : f32 to vector<1x128xf32>
    %16 = arith.addf %13, %15 : vector<1x128xf32>
    %17 = math.rsqrt %16 : vector<1x128xf32>
    %18 = arith.mulf %14, %17 : vector<1x128xf32>
    %c1 = arith.constant 1 : index
    %c0_10 = arith.constant 0 : index
    %19 = vector.load %arg2[%c1, %c0_10] : memref<2x128xf32, #tpu.memory_space<vmem>>, vector<1x128xf32>
    %20 = arith.mulf %9, %18 : vector<1x128xf32>
    %21 = arith.subf %19, %20 : vector<1x128xf32>
    %22 = vector.broadcast %18 : vector<1x128xf32> to vector<8x128xf32>
    %23 = arith.mulf %2, %22 : vector<8x128xf32>
    %24 = vector.broadcast %21 : vector<1x128xf32> to vector<8x128xf32>
    %25 = arith.addf %23, %24 : vector<8x128xf32>
    %cst_11 = arith.constant 0.000000e+00 : f32
    %26 = vector.broadcast %cst_11 : f32 to vector<8x128xf32>
    %27 = arith.maximumf %25, %26 : vector<8x128xf32>
    %c0_12 = arith.constant 0 : index
    %c0_13 = arith.constant 0 : index
    %28 = vector.load %arg3[%c0_12, %c0_13] : memref<128x64xf32, #tpu.memory_space<vmem>>, vector<128x64xf32>
    %cst_14 = arith.constant dense<0.000000e+00> : vector<8x64xf32>
    %29 = tpu.matmul %27, %28, %cst_14 {dimension_numbers = #tpu.dot_dimension_numbers<[1], [0], [0], [1], [0, 0, 1, 1], [], []>} : vector<8x128xf32>, vector<128x64xf32>, vector<8x64xf32> -> vector<8x64xf32>
    %cst_15 = arith.constant dense<0.000000e+00> : vector<64xf32>
    %30 = vector.multi_reduction <add>, %29, %cst_15 [0] : vector<8x64xf32> to vector<64xf32>
    %31 = vector.shape_cast %30 : vector<64xf32> to vector<1x64xf32>
    %32 = arith.mulf %29, %29 : vector<8x64xf32>
    %cst_16 = arith.constant dense<0.000000e+00> : vector<64xf32>
    %33 = vector.multi_reduction <add>, %32, %cst_16 [0] : vector<8x64xf32> to vector<64xf32>
    %34 = vector.shape_cast %33 : vector<64xf32> to vector<1x64xf32>
    %cst_17 = arith.constant 1.250000e-01 : f32
    %35 = vector.broadcast %cst_17 : f32 to vector<1x64xf32>
    %36 = arith.mulf %31, %35 : vector<1x64xf32>
    %cst_18 = arith.constant 1.250000e-01 : f32
    %37 = vector.broadcast %cst_18 : f32 to vector<1x64xf32>
    %38 = arith.mulf %34, %37 : vector<1x64xf32>
    %39 = arith.mulf %36, %36 : vector<1x64xf32>
    %40 = arith.subf %38, %39 : vector<1x64xf32>
    %c0_19 = arith.constant 0 : index
    %c0_20 = arith.constant 0 : index
    %41 = vector.load %arg4[%c0_19, %c0_20] : memref<2x64xf32, #tpu.memory_space<vmem>>, vector<1x64xf32>
    %cst_21 = arith.constant 9.99999974E-6 : f32
    %42 = vector.broadcast %cst_21 : f32 to vector<1x64xf32>
    %43 = arith.addf %40, %42 : vector<1x64xf32>
    %44 = math.rsqrt %43 : vector<1x64xf32>
    %45 = arith.mulf %41, %44 : vector<1x64xf32>
    %c1_22 = arith.constant 1 : index
    %c0_23 = arith.constant 0 : index
    %46 = vector.load %arg4[%c1_22, %c0_23] : memref<2x64xf32, #tpu.memory_space<vmem>>, vector<1x64xf32>
    %47 = arith.mulf %36, %45 : vector<1x64xf32>
    %48 = arith.subf %46, %47 : vector<1x64xf32>
    %49 = vector.broadcast %45 : vector<1x64xf32> to vector<8x64xf32>
    %50 = arith.mulf %29, %49 : vector<8x64xf32>
    %51 = vector.broadcast %48 : vector<1x64xf32> to vector<8x64xf32>
    %52 = arith.addf %50, %51 : vector<8x64xf32>
    %cst_24 = arith.constant 0.000000e+00 : f32
    %53 = vector.broadcast %cst_24 : f32 to vector<8x64xf32>
    %54 = arith.maximumf %52, %53 : vector<8x64xf32>
    %c0_25 = arith.constant 0 : index
    %c0_26 = arith.constant 0 : index
    %55 = vector.load %arg5[%c0_25, %c0_26] : memref<64x128xf32, #tpu.memory_space<vmem>>, vector<64x128xf32>
    %cst_27 = arith.constant dense<0.000000e+00> : vector<8x128xf32>
    %56 = tpu.matmul %54, %55, %cst_27 {dimension_numbers = #tpu.dot_dimension_numbers<[1], [0], [0], [1], [0, 0, 1, 1], [], []>} : vector<8x64xf32>, vector<64x128xf32>, vector<8x128xf32> -> vector<8x128xf32>
    %c0_28 = arith.constant 0 : index
    %c0_29 = arith.constant 0 : index
    %57 = vector.load %arg6[%c0_28, %c0_29] : memref<1x128xf32, #tpu.memory_space<vmem>>, vector<1x128xf32>
    %58 = vector.broadcast %57 : vector<1x128xf32> to vector<8x128xf32>
    %59 = arith.addf %56, %58 : vector<8x128xf32>
    %cst_30 = arith.constant dense<0xFF800000> : vector<8xf32>
    %60 = vector.multi_reduction <maximumf>, %59, %cst_30 [1] : vector<8x128xf32> to vector<8xf32>
    %61 = vector.shape_cast %60 : vector<8xf32> to vector<8x1xf32>
    %62 = vector.broadcast %61 : vector<8x1xf32> to vector<8x128xf32>
    %63 = arith.subf %59, %62 : vector<8x128xf32>
    %64 = math.exp %63 : vector<8x128xf32>
    %cst_31 = arith.constant dense<0.000000e+00> : vector<8xf32>
    %65 = vector.multi_reduction <add>, %64, %cst_31 [1] : vector<8x128xf32> to vector<8xf32>
    %66 = vector.shape_cast %65 : vector<8xf32> to vector<8x1xf32>
    %67 = tpu.reciprocal %66 {approx = true} : vector<8x1xf32> -> vector<8x1xf32>
    %68 = vector.broadcast %67 : vector<8x1xf32> to vector<8x128xf32>
    %69 = arith.mulf %64, %68 : vector<8x128xf32>
    %c0_32 = arith.constant 0 : index
    %c0_33 = arith.constant 0 : index
    %70 = vector.load %arg7[%c0_32, %c0_33] : memref<8x128xf32, #tpu.memory_space<vmem>>, vector<8x128xf32>
    tpu.vector_store %arg7[%c0_32, %c0_33], %69 {strides = array<i32>} : memref<8x128xf32, #tpu.memory_space<vmem>>, vector<8x128xf32>,
    return
  }
}

</mosaic_0001>

<bundles_post_ra>
// kernel: fcnn_forward.1
= control target key start
LH: loop header
LB: loop body
LE: loop exit
PB: predicated region body
PF: predicated region fallthrough
CT: control target
= control target key end

     0   :  { %v552_v2 = vmov 0.0|0.0   ;;  %s729_s0 = inlined_call_operand.vmem [shape: f32[8,20], index: 0, kind: input, shape index: {}]   ;;  %s730_s1 = inlined_call_operand.vmem [shape: f32[20,128], index: 1, kind: input, shape index: {}]   ;;  %s731_s2 = inlined_call_operand.vmem [shape: f32[2,128], index: 2, kind: input, shape index: {}]   ;;  %s732_s3 = inlined_call_operand.vmem [shape: f32[128,64], index: 3, kind: input, shape index: {}]   ;;  %s733_s4 = inlined_call_operand.vmem [shape: f32[2,64], index: 4, kind: input, shape index: {}]   ;;  %s734_s5 = inlined_call_operand.vmem [shape: f32[64,128], index: 5, kind: input, shape index: {}]   ;;  %s735_s6 = inlined_call_operand.vmem [shape: f32[1,128], index: 6, kind: input, shape index: {}]   ;;  %s736_s7 = inlined_call_operand.hbm [shape: f32[8,128], index: 7, kind: output, shape index: {}]  }
   0x1   :  { %v28_v0 = vld [vmem:[%s730_s1] sm:$0xff]  ;;  %v29_v1 = vld [vmem:[%s730_s1 + $0x8] sm:$0xff]  ;;  %477 = vmatprep.subr.bf16.mxu0 %v552_v2  ;;  %480 = vmatprep.subr.bf16.mxu1 %v552_v2 }
   0x2   :  { %v478_v3 = vpack.c.bf16 %v29_v1, %v28_v0 }
   0x3   :  { %12 = vsyncpa [#allocation3], 0  ;;  %vm553_vm0 = vmmov 0   ;;  %v554_v4 = vmov 0.0   ;;  %v30_v5 = vld [vmem:[%s730_s1 + $0x10] sm:$0xf]  ;;  %v133_v51 = vlaneseq }
   0x4   :  { %420 = vmatprep.mubr.msk.f32.mxu0 %vm553_vm0, %v554_v4  ;;  %455 = vmatprep.mubr.msk.f32.mxu1 %vm553_vm0, %v554_v4  ;;  %vm35_vm1 = vcmask 1043456   ;;  %v27_v6 = vld [vmem:[%s729_s0] sm:$0xff]  ;;  %vm31_vm2 = vcmask 162816   ;;  %v145_v8 = vld [vmem:[%s732_s3 + $0x8] sm:$0xff]  ;;  %v146_v10 = vld [vmem:[%s732_s3 + $0x10] sm:$0xff]  ;;  %vm230_vm3 = vcmask 523264  }
   0x5   :  { %479 = vmatpush3.bf16.msra.mxu0 %v478_v3  ;;  %v144_v7 = vld [vmem:[%s732_s3] sm:$0xff]  ;;  %v147_v11 = vld [vmem:[%s732_s3 + $0x18] sm:$0xff]  ;;  %v149_v14 = vld [vmem:[%s732_s3 + $0x28] sm:$0xff]  ;;  %v134_v52 = vshrl.u32 %v133_v51, 7 }
   0x6   :  { %418 = vmatprep.subr.mxu0 %v554_v4  ;;  %v481_v9 = vpack.c.bf16 %v145_v8, %v144_v7  ;;  %v484_v12 = vpack.c.bf16 %v147_v11, %v146_v10  ;;  %v148_v13 = vld [vmem:[%s732_s3 + $0x20] sm:$0xff]  ;;  %v150_v16 = vld [vmem:[%s732_s3 + $0x30] sm:$0xff]  ;;  %v151_v17 = vld [vmem:[%s732_s3 + $0x38] sm:$0xff] }
   0x7   :  { %v487_v15 = vpack.c.bf16 %v149_v14, %v148_v13  ;;  %v490_v18 = vpack.c.bf16 %v151_v17, %v150_v16  ;;  %v152_v19 = vld [vmem:[%s732_s3 + $0x40] sm:$0xff]  ;;  %v153_v20 = vld [vmem:[%s732_s3 + $0x48] sm:$0xff]  ;;  %v154_v22 = vld [vmem:[%s732_s3 + $0x50] sm:$0xff]  ;;  %v669_v54 = vsub.s32 0, %v134_v52 }
   0x8   :  { %482 = vmatpush3.bf16.msra.mxu1 %v481_v9  ;;  %v493_v21 = vpack.c.bf16 %v153_v20, %v152_v19  ;;  %v155_v23 = vld [vmem:[%s732_s3 + $0x58] sm:$0xff]  ;;  %v156_v25 = vld [vmem:[%s732_s3 + $0x60] sm:$0xff]  ;;  %v157_v26 = vld [vmem:[%s732_s3 + $0x68] sm:$0xff] }
   0x9   :  { %419 = vmatpush3.msk.msra.mxu0 %vm35_vm1, %v30_v5  ;;  %483 = vmatprep.subr.bf16.mxu1 %v552_v2  ;;  %v496_v24 = vpack.c.bf16 %v155_v23, %v154_v22  ;;  %v499_v27 = vpack.c.bf16 %v157_v26, %v156_v25  ;;  %v158_v28 = vld [vmem:[%s732_s3 + $0x70] sm:$0xff]  ;;  %v159_v29 = vld [vmem:[%s732_s3 + $0x78] sm:$0xff]  ;;  %v126_v53 = vld [vmem:[%s731_s2] sm:$0x1] }
   0xa   :  { %421 = vmatmul.mubr.msk.f32.vlgmr.msra.gmra.mrb[0].mxu0 %vm31_vm2, %v27_v6  ;;  %504 = vmatprep.subr.bf16.mxu0 %v552_v2  ;;  %v502_v30 = vpack.c.bf16 %v159_v29, %v158_v28  ;;  %v130_v57 = vld [vmem:[%s731_s2 + $0x1] sm:$0x1]  ;;  %v269_v3 = vld [vmem:[%s734_s5 + $0x8] sm:$0xff]  ;;  %v270_v5 = vld [vmem:[%s734_s5 + $0x10] sm:$0xff] }
   0xb   :  { %474 = vmatprep.mubr.msk.f32.mxu0 %vm553_vm0, %v554_v4  ;;  %v268_v1 = vld [vmem:[%s734_s5] sm:$0xff]  ;;  %v271_v6 = vld [vmem:[%s734_s5 + $0x18] sm:$0xff]  ;;  %v273_v9 = vld [vmem:[%s734_s5 + $0x28] sm:$0xff] }
   0xc   :  { %485 = vmatpush3.bf16.msra.mxu1 %v484_v12  ;;  %v505_v4 = vpack.c.bf16 %v269_v3, %v268_v1  ;;  %v508_v7 = vpack.c.bf16 %v271_v6, %v270_v5  ;;  %v272_v8 = vld [vmem:[%s734_s5 + $0x20] sm:$0xff]  ;;  %v274_v11 = vld [vmem:[%s734_s5 + $0x30] sm:$0xff]  ;;  %v275_v12 = vld [vmem:[%s734_s5 + $0x38] sm:$0xff] }
   0xd   :  { %486 = vmatprep.subr.bf16.mxu1 %v552_v2  ;;  %v511_v10 = vpack.c.bf16 %v273_v9, %v272_v8  ;;  %v514_v13 = vpack.c.bf16 %v275_v12, %v274_v11 }
   0xe   :  { %506 = vmatpush3.bf16.msra.mxu0 %v505_v4 }
   0xf   :  { %507 = vmatprep.subr.bf16.mxu0 %v552_v2 }
  0x10   :  { %488 = vmatpush3.bf16.msra.mxu1 %v487_v15 }
  0x11   :  { %489 = vmatprep.subr.bf16.mxu1 %v552_v2 }
  0x12   :  { %509 = vmatpush3.bf16.msra.mxu0 %v508_v7 }
  0x13   :  { %510 = vmatprep.subr.bf16.mxu0 %v552_v2 }
  0x14   :  { %491 = vmatpush3.bf16.msra.mxu1 %v490_v18 }
  0x15   :  { %492 = vmatprep.subr.bf16.mxu1 %v552_v2 }
  0x16   :  { %512 = vmatpush3.bf16.msra.mxu0 %v511_v10 }
  0x17   :  { %513 = vmatprep.subr.bf16.mxu0 %v552_v2 }
  0x18   :  { %494 = vmatpush3.bf16.msra.mxu1 %v493_v21 }
  0x19   :  { %495 = vmatprep.subr.bf16.mxu1 %v552_v2 }
  0x1a   :  { %515 = vmatpush3.bf16.msra.mxu0 %v514_v13 }
  0x1c   :  { %497 = vmatpush3.bf16.msra.mxu1 %v496_v24 }
  0x1d   :  { %498 = vmatprep.subr.bf16.mxu1 %v552_v2 }
  0x20   :  { %500 = vmatpush3.bf16.msra.mxu1 %v499_v27 }
  0x21   :  { %501 = vmatprep.subr.bf16.mxu1 %v552_v2 }
  0x24   :  { %503 = vmatpush3.bf16.msra.mxu1 %v502_v30 }
  0xdd   :  { %v105_v31 = vpop.f32.mrb[0].mxu0 }
  0xde   :  { %v109_v32 = vrot.slane %v105_v31, 4  ;;  %v115_v33 = vmul.f32 %v105_v31, %v105_v31  ;;  %v422_v34 = vpop.f32.mrb[1].mxu0 }
  0xe0   :  { %v110_v35 = vadd.f32 %v109_v32, %v105_v31  ;;  %v116_v36 = vrot.slane %v115_v33, 4 }
  0xe2   :  { %v111_v37 = vrot.slane %v110_v35, 2  ;;  %v117_v38 = vadd.f32 %v116_v36, %v115_v33 }
  0xe4   :  { %v112_v39 = vadd.f32 %v111_v37, %v110_v35  ;;  %v118_v40 = vrot.slane %v117_v38, 2  ;;  %v250_v35 = vld [vmem:[%s733_s4] sm:$0x1] }
  0xe6   :  { %v113_v41 = vrot.slane %v112_v39, 1  ;;  %v119_v42 = vadd.f32 %v118_v40, %v117_v38  ;;  %v254_v38 = vld [vmem:[%s733_s4 + $0x1] sm:$0x1]  ;;  %s555_s4 = smov [#allocation2]  }
  0xe7   :  { %s372_s0 = sshll.u32 %s555_s4, 4  ;;  %s373_s0 = int_to_ptr.vmem [resolvable:$true] %s372_s0 }
  0xe8   :  { %v114_v43 = vadd.f32 %v113_v41, %v112_v39  ;;  %v120_v44 = vrot.slane %v119_v42, 1  ;;  %s528_s13 = scalar_lea.vmem %s373_s0, 128  ;;  %p533_p1 = scmp.lt.s32.totalorder %s373_s0, %s373_s0 }
  0xe9   :  { %p529_p0 = scmp.ne.s32.totalorder %s373_s0, %s528_s13  ;;  %p534_p2 = scmp.lt.s32.totalorder %s528_s13, %s528_s13 }
  0xea   :  { %v121_v45 = vadd.f32 %v120_v44, %v119_v42  ;;  %v122_v46 = vmul.f32 0.125, %v114_v43 }
  0xeb   :  { %p535_p3 = por %p534_p2, %p533_p1 }
  0xec   :  { %v123_v47 = vmul.f32 0.125, %v121_v45  ;;  %v124_v48 = vmul.f32 %v122_v46, %v122_v46 }
  0xed   :  { %p536_p4 = pnand %p535_p3, %p529_p0 }
  0xee   :  { %v125_v49 = vsub.f32 %v123_v47, %v124_v48 }
  0xf0   :  { %v127_v50 = vadd.f32 1e-05, %v125_v49 }
  0xf2   :  { %520 = vrsqrt.f32 %v127_v50 }
  0xfc   :  { %v521_v55 = vpop.eup %520 }
  0xfd   :  { %v129_v56 = vmul.f32 %v521_v55, %v126_v53 }
  0xff   :  { %v136_v58 = vrot.slane %v129_v56, %v669_v54  ;;  %v131_v59 = vmul.f32 %v129_v56, %v122_v46  ;;  %v382_v46 = vld [vmem:[%s735_s6] ss:$0 sm:$0xff] }
 0x101   :  { %v132_v60 = vsub.f32 %v130_v57, %v131_v59  ;;  %v137_v61 = vmul.f32 %v136_v58, %v105_v31 }
 0x103   :  { %v141_v62 = vrot.slane %v132_v60, %v669_v54 }
 0x105   :  { %v142_v63 = vadd.f32 %v141_v62, %v137_v61 }
 0x107   :  { %v143_v0 = vmax.f32 %v142_v63, 0.0 }
 0x109   :  { %456 = vmatmul.mubr.f32.vlgmr.msra.gmra.mrb[0].mxu1 %v143_v0 }
 0x1dc   :  { %v226_v14 = vpop.f32.mrb[0].mxu1 }
 0x1dd   :  { %v231_v15 = vsel %vm230_vm3, %v226_v14, 0.0  ;;  %v238_v16 = vmul.f32 %v226_v14, %v226_v14  ;;  %v457_v17 = vpop.f32.mrb[1].mxu1 }
 0x1de   :  { %v232_v18 = vrot.slane %v231_v15, 4 }
 0x1df   :  { %v239_v19 = vsel %vm230_vm3, %v238_v16, 0.0 }
 0x1e0   :  { %v233_v2 = vadd.f32 %v232_v18, %v231_v15  ;;  %v240_v20 = vrot.slane %v239_v19, 4 }
 0x1e2   :  { %v234_v21 = vrot.slane %v233_v2, 2  ;;  %v241_v22 = vadd.f32 %v240_v20, %v239_v19 }
 0x1e4   :  { %v235_v23 = vadd.f32 %v234_v21, %v233_v2  ;;  %v242_v24 = vrot.slane %v241_v22, 2 }
 0x1e6   :  { %v236_v25 = vrot.slane %v235_v23, 1  ;;  %v243_v26 = vadd.f32 %v242_v24, %v241_v22 }
 0x1e8   :  { %v237_v27 = vadd.f32 %v236_v25, %v235_v23  ;;  %v244_v28 = vrot.slane %v243_v26, 1 }
 0x1ea   :  { %v245_v29 = vadd.f32 %v244_v28, %v243_v26  ;;  %v246_v30 = vmul.f32 0.125, %v237_v27 }
 0x1ec   :  { %v247_v31 = vmul.f32 0.125, %v245_v29  ;;  %v248_v32 = vmul.f32 %v246_v30, %v246_v30 }
 0x1ee   :  { %v249_v33 = vsub.f32 %v247_v31, %v248_v32 }
 0x1f0   :  { %v251_v34 = vadd.f32 1e-05, %v249_v33 }
 0x1f2   :  { %522 = vrsqrt.f32 %v251_v34 }
 0x1fc   :  { %v523_v36 = vpop.eup %522 }
 0x1fd   :  { %v253_v37 = vmul.f32 %v523_v36, %v250_v35 }
 0x1ff   :  { %v255_v39 = vmul.f32 %v253_v37, %v246_v30  ;;  %v260_v40 = vrot.slane %v253_v37, %v669_v54 }
 0x201   :  { %v256_v41 = vsub.f32 %v254_v38, %v255_v39  ;;  %v261_v42 = vmul.f32 %v260_v40, %v226_v14 }
 0x203   :  { %v265_v43 = vrot.slane %v256_v41, %v669_v54 }
 0x205   :  { %v266_v44 = vadd.f32 %v265_v43, %v261_v42 }
 0x207   :  { %v267_v45 = vmax.f32 %v266_v44, 0.0 }
 0x209   :  { %475 = vmatmul.mubr.msk.f32.vlgmr.msra.gmra.mrb[2].mxu0 %vm230_vm3, %v267_v45 }
 0x2dc   :  { %v352_v47 = vpop.f32.mrb[2].mxu0 }
 0x2dd   :  { %v353_v48 = vadd.f32 %v382_v46, %v352_v47  ;;  %v476_v49 = vpop.f32.mrb[3].mxu0 }
 0x2df   :  { %356 = vmax.xlane.f32.xlu0 %v353_v48 }
 0x36c   :  { %v357_v50 = vpop.xlane.xlu0 %356 }
 0x36d   :  { %v358_v51 = vsub.f32 %v353_v48, %v357_v50 }
 0x36f   :  { %v359_v52 = vmul.f32 1.442695, %v358_v51 }
 0x371   :  { %524 = vpow2.f32 %v359_v52 }
 0x37b   :  { %v525_v53 = vpop.eup %524 }
 0x37c   :  { %361 = vadd.xlane.f32.xlu0 %v525_v53 }
 0x409   :  { %v362_v55 = vpop.xlane.xlu0 %361 }
 0x40a   :  { %526 = vrcp.f32 %v362_v55 }
 0x414   :  { %v527_v54 = vpop.eup %526 }
 0x415   :  { %v364_v56 = vmul.f32 %v527_v54, %v525_v53 }
 0x417   :  { %365 = vst [vmem:[#allocation2] sm:$0xff] %v364_v56 }
 0x418   :  { %539 = shalt.err (!%p536_p4)
}
 0x419   :  { %s540_s14 = scalar_lea.hbm %s736_s7, 128 }
 0x41a   :  { %p541_p5 = scmp.ne.s32.totalorder %s736_s7, %s540_s14  ;;  %p544_p6 = scmp.lt.u32.totalorder %s540_s14, %s736_s7 }
 0x41c   :  { %p546_p7 = pnand %p544_p6, %p541_p5 }
 0x41e   :  { %549 = shalt.err (!%p546_p7)
}
 0x41f   :  { %375 = dma.vmem_to_hbm [thread:$0]  %s373_s0, 128, %s736_s7, [#allocation3]  }
 0x420   :  { %550 = dma.done.wait [#allocation3], 128  }
 0x421   :  { %551 = vsyncadd [#allocation3], 4294967168 }
 0x422   :  { %379 = vsyncpa [#allocation3], 1 }

</bundles_post_ra>
